<compile_context>
chip_gen: v7x
topology: tpu7x:2x2x1
jax: 0.10.0
libtpu: 0.0.40
codegen_flags: <defaults>
</compile_context>

<pallas_src>
import jax
import jax.numpy as jnp
from jax.experimental import pallas as pl
from jax.experimental.pallas import tpu as pltpu


# --------------------------------------------------------------------------
# Kernel: one tile = one matmul + bias add + store.
# --------------------------------------------------------------------------
def _ynet_kernel(x_ref, w_ref, b_ref, o_ref):
    # x_ref: (C, tile_hw)        current spatial tile (batch squeezed)
    # w_ref: (C_out, C)          stacked effective weights (C_out = nb*C)
    # b_ref: (C_out, 1)          stacked effective biases
    # o_ref: (C_out, tile_hw)    stacked z2 slab for this tile
    o_ref[...] = (
        jnp.dot(w_ref[...], x_ref[...], preferred_element_type=jnp.float32)
        + b_ref[...]
    ).astype(o_ref.dtype)


# --------------------------------------------------------------------------
# Wrapper-side helpers.
# --------------------------------------------------------------------------
def _compose_affine_chain(weights, biases, c):
    """Fold the sequential block chain into one stacked affine map.

    net_k = A_k x + c_k   with  A_0 = I, c_0 = 0,
    A_{k+1} = W1_k A_k,   c_{k+1} = W1_k c_k + b1_k,
    z2_k   = W2_k A_k x + (W2_k c_k + b2_k).
    """
    nb = weights.shape[0]
    w1, w2 = weights[:, :c, :], weights[:, c:, :]
    b1, b2 = biases[:, :c, :], biases[:, c:, :]
    a = jnp.eye(c, dtype=weights.dtype)
    cv = jnp.zeros((c, 1), dtype=weights.dtype)
    w_rows, b_rows = [], []
    for k in range(nb):
        w_rows.append(w2[k] @ a)
        b_rows.append(w2[k] @ cv + b2[k])
        a = w1[k] @ a
        cv = w1[k] @ cv + b1[k]
    return jnp.concatenate(w_rows, axis=0), jnp.concatenate(b_rows, axis=0)


def _round_up(x, m):
    return (x + m - 1) // m * m


def _vmem_budget_and_limit():
    """(pipelined-buffer budget, vmem_limit_bytes) per TPU generation."""
    kind = ""
    try:
        kind = jax.devices()[0].device_kind.lower()
    except Exception:
        pass
    if ("v5" in kind) or ("v6" in kind):
        # 128 MiB physical VMEM parts: allow large tiles / limits.
        return 48 * 1024 * 1024, 96 * 1024 * 1024
    # v7x (64 MiB physical / 32 MiB default scoped) or unknown: conservative.
    return 20 * 1024 * 1024, 48 * 1024 * 1024


def _choose_tile(hw, batch, c_in, c_out, buf_budget_bytes, min_steps=8):
    """Pick a lane-dense spatial tile from the VMEM budget; return (tile, hw_pad)."""
    # Per-lane-column f32 footprint: double-buffered x tile + double-buffered
    # output slab + in-kernel dot-result temporary.
    bytes_per_col = 4 * (2 * c_in + 3 * c_out)
    target = max(128, (buf_budget_bytes // bytes_per_col) // 128 * 128)
    if hw <= 128:
        return hw, hw                       # tiny case: full extent, no padding
    hw128 = _round_up(hw, 128)
    tile = min(target, hw128)
    # Keep enough grid steps so v7x megacore sharding and double-buffering engage.
    while tile > 128 and batch * pl.cdiv(hw128, tile) < min_steps:
        tile = max(128, _round_up(tile // 2, 128))
    hw_pad = pl.cdiv(hw, tile) * tile
    return tile, hw_pad


# --------------------------------------------------------------------------
# Public forward pass (mirrors YNetWithSplit.forward).
# --------------------------------------------------------------------------
def ynet_with_split(x_nchw, weights, biases):
    """x: (B, C, H, W) f32; weights: (nb, 2C, C); biases: (nb, 2C, 1).
    Returns a list of nb tensors, each (B, C, H, W) — the z2 of every block."""
    b_, c, h, w = x_nchw.shape
    hw = h * w
    nb = weights.shape[0]
    assert weights.shape == (nb, 2 * c, c)
    assert biases.shape == (nb, 2 * c, 1)
    c_out = nb * c

    # Compose the affine chain once (tiny O(nb*C^3) XLA-side work).
    w_eff, b_eff = _compose_affine_chain(weights, biases, c)   # (c_out, C), (c_out, 1)

    # NCHW -> (B, C, H*W): pure reshape of trailing dims, no data movement.
    x3d = x_nchw.reshape(b_, c, hw)

    buf_budget, vmem_cap = _vmem_budget_and_limit()
    tile_hw, hw_pad = _choose_tile(hw, b_, c, c_out, buf_budget)
    if hw_pad != hw:
        x3d = jnp.pad(x3d, ((0, 0), (0, 0), (0, hw_pad - hw)))
    num_tiles = hw_pad // tile_hw
    grid = (b_, num_tiles)

    # VMEM accounting: pipelined buffers + resident params + kernel temp.
    vmem_est = (
        2 * c * tile_hw * 4
        + 2 * c_out * tile_hw * 4
        + c_out * tile_hw * 4
        + (c_out * c + c_out) * 4
    )
    vmem_limit = int(min(max(2 * vmem_est, 16 * 1024 * 1024), vmem_cap))

    # Advisory cost: purely HBM-bound (x read + stacked z2 write dominate).
    cost = pl.CostEstimate(
        flops=2 * b_ * hw_pad * c * c_out,
        transcendentals=0,
        bytes_accessed=(b_ * c * hw_pad + b_ * c_out * hw_pad
                        + c_out * c + c_out) * 4,
    )

    out = pl.pallas_call(
        _ynet_kernel,
        out_shape=jax.ShapeDtypeStruct((b_, c_out, hw_pad), jnp.float32),
        grid_spec=pltpu.PrefetchScalarGridSpec(
            num_scalar_prefetch=0,
            grid=grid,
            in_specs=[
                # x tile: batch squeezed, channels on sublanes, HW on lanes.
                pl.BlockSpec((None, c, tile_hw), lambda bi, ti: (bi, 0, ti)),
                # Effective weights / biases: resident across the whole grid.
                pl.BlockSpec((c_out, c), lambda bi, ti: (0, 0)),
                pl.BlockSpec((c_out, 1), lambda bi, ti: (0, 0)),
            ],
            out_specs=pl.BlockSpec((None, c_out, tile_hw),
                                   lambda bi, ti: (bi, 0, ti)),
        ),
        compiler_params=pltpu.CompilerParams(
            dimension_semantics=("parallel", "parallel"),
            vmem_limit_bytes=vmem_limit,
        ),
        cost_estimate=cost,
    )(x3d, w_eff, b_eff)

    if hw_pad != hw:
        out = out[:, :, :hw]
    # Split the stacked slab back into the per-block list (matches PyTorch API).
    return [out[:, k * c:(k + 1) * c, :].reshape(b_, c, h, w) for k in range(nb)]


# --------------------------------------------------------------------------
# Plain-JAX sequential reference (for correctness check).
# --------------------------------------------------------------------------
def _reference(x_nchw, weights, biases):
    b_, c, h, w = x_nchw.shape
    net = x_nchw.reshape(b_, c, h * w)
    zs = []
    for blk in range(weights.shape[0]):
        y = jnp.einsum("oc,bcs->bos", weights[blk], net) + biases[blk][None, :, :]
        z1, z2 = y[:, :c, :], y[:, c:, :]
        zs.append(z2.reshape(b_, c, h, w))
        net = z1
    return zs


if __name__ == "__main__":
    key = jax.random.PRNGKey(0)

    B, C, H, W = 2, 8, 16, 16        # HW = 256 -> lane-dense tiles
    NUM_BLOCKS = 3

    key, xk = jax.random.split(key)
    x = jax.random.normal(xk, (B, C, H, W), dtype=jnp.float32)

    ws, bs = [], []
    for _ in range(NUM_BLOCKS):
        key, wk, bk = jax.random.split(key, 3)
        ws.append(jax.random.normal(wk, (2 * C, C), dtype=jnp.float32) * 0.1)
        bs.append(jax.random.normal(bk, (2 * C, 1), dtype=jnp.float32) * 0.01)
    weights = jnp.stack(ws)          # (NUM_BLOCKS, 2C, C)
    biases = jnp.stack(bs)           # (NUM_BLOCKS, 2C, 1)

    zs = ynet_with_split(x, weights, biases)
    zs = [jax.block_until_ready(z) for z in zs]

    zs_ref = _reference(x, weights, biases)
    for z, zr in zip(zs, zs_ref):
        assert z.shape == (B, C, H, W)
        # Composed affine chain reassociates fp32 ops vs the sequential ref.
        assert jnp.allclose(z, zr, atol=1e-4, rtol=1e-4), "mismatch vs reference"

    print("KERNEL_OK")
</pallas_src>

<mosaic_0001>
module attributes {stable_mosaic.version = 11 : i64} {
  func.func @_ynet_kernel(%arg0: i32, %arg1: i32, %arg2: memref<1x8x128xf32, #tpu.memory_space<vmem>>, %arg3: memref<24x8xf32, #tpu.memory_space<vmem>>, %arg4: memref<24x1xf32, #tpu.memory_space<vmem>>, %arg5: memref<1x24x128xf32, #tpu.memory_space<vmem>>) attributes {dimension_semantics = [#tpu.dimension_semantics<parallel>, #tpu.dimension_semantics<parallel>], iteration_bounds = array<i64: 2, 2>, scalar_prefetch = 0 : i64, scratch_operands = 0 : i64, tpu.core_type = #tpu.core_type<tc>, window_params = [{transform_indices = @transform_0, window_bounds = array<i64: 1, 8, 128>}, {pipeline_mode = #tpu.pipeline_mode<synchronous>, transform_indices = @transform_1, window_bounds = array<i64: 24, 8>}, {pipeline_mode = #tpu.pipeline_mode<synchronous>, transform_indices = @transform_2, window_bounds = array<i64: 24, 1>}, {transform_indices = @transform_3, window_bounds = array<i64: 1, 24, 128>}]} {
    %c0 = arith.constant 0 : index
    %c0_0 = arith.constant 0 : index
    %0 = vector.load %arg3[%c0, %c0_0] : memref<24x8xf32, #tpu.memory_space<vmem>>, vector<24x8xf32>
    %c0_1 = arith.constant 0 : index
    %c0_2 = arith.constant 0 : index
    %c0_3 = arith.constant 0 : index
    %1 = vector.load %arg2[%c0_1, %c0_2, %c0_3] : memref<1x8x128xf32, #tpu.memory_space<vmem>>, vector<1x8x128xf32>
    %2 = vector.shape_cast %1 : vector<1x8x128xf32> to vector<8x128xf32>
    %cst = arith.constant dense<0.000000e+00> : vector<24x128xf32>
    %3 = tpu.matmul %0, %2, %cst {dimension_numbers = #tpu.dot_dimension_numbers<[1], [0], [0], [1], [0, 0, 1, 1], [], []>} : vector<24x8xf32>, vector<8x128xf32>, vector<24x128xf32> -> vector<24x128xf32>
    %c0_4 = arith.constant 0 : index
    %c0_5 = arith.constant 0 : index
    %4 = vector.load %arg4[%c0_4, %c0_5] : memref<24x1xf32, #tpu.memory_space<vmem>>, vector<24x1xf32>
    %5 = vector.broadcast %4 : vector<24x1xf32> to vector<24x128xf32>
    %6 = arith.addf %3, %5 : vector<24x128xf32>
    %c0_6 = arith.constant 0 : index
    %c0_7 = arith.constant 0 : index
    %c0_8 = arith.constant 0 : index
    %7 = vector.load %arg5[%c0_6, %c0_7, %c0_8] : memref<1x24x128xf32, #tpu.memory_space<vmem>>, vector<1x24x128xf32>
    %8 = vector.shape_cast %7 : vector<1x24x128xf32> to vector<24x128xf32>
    %9 = vector.shape_cast %6 : vector<24x128xf32> to vector<1x24x128xf32>
    tpu.vector_store %arg5[%c0_6, %c0_7, %c0_8], %9 {strides = array<i32>} : memref<1x24x128xf32, #tpu.memory_space<vmem>>, vector<1x24x128xf32>,
    return
  }
  func.func @transform_0(%arg0: i32, %arg1: i32) -> (i32, i32, i32) {
    %c0_i32 = arith.constant 0 : i32
    %c0_i32_0 = arith.constant 0 : i32
    return %arg0, %c0_i32, %arg1 : i32, i32, i32
  }
  func.func @transform_1(%arg0: i32, %arg1: i32) -> (i32, i32) {
    %c0_i32 = arith.constant 0 : i32
    %c0_i32_0 = arith.constant 0 : i32
    %c0_i32_1 = arith.constant 0 : i32
    return %c0_i32, %c0_i32_0 : i32, i32
  }
  func.func @transform_2(%arg0: i32, %arg1: i32) -> (i32, i32) {
    %c0_i32 = arith.constant 0 : i32
    %c0_i32_0 = arith.constant 0 : i32
    %c0_i32_1 = arith.constant 0 : i32
    return %c0_i32, %c0_i32_0 : i32, i32
  }
  func.func @transform_3(%arg0: i32, %arg1: i32) -> (i32, i32, i32) {
    %c0_i32 = arith.constant 0 : i32
    %c0_i32_0 = arith.constant 0 : i32
    return %arg0, %c0_i32, %arg1 : i32, i32, i32
  }
}

</mosaic_0001>

<bundles_post_ra>
// kernel: tpu_custom_call.1
= control target key start
LH: loop header
LB: loop body
LE: loop exit
PB: predicated region body
PF: predicated region fallthrough
CT: control target
= control target key end

     0   :  { %8 = vsyncpa [#allocation3], 0  ;;  %s800_s0 = inlined_call_operand.vmem [shape: f32[2,8,256], index: 0, kind: input, shape index: {}]   ;;  %s801_s1 = inlined_call_operand.vmem [shape: f32[24,8], index: 1, kind: input, shape index: {}]   ;;  %s802_s2 = inlined_call_operand.vmem [shape: f32[24,1], index: 2, kind: input, shape index: {}]   ;;  %s803_s3 = inlined_call_operand.hbm [shape: f32[2,24,256], index: 3, kind: output, shape index: {}]  }
   0x1   :  { %10 = vsyncpa [#allocation3 + $0x1], 0  ;;  %s639_s12 = smov 0   ;;  %s641_s13 = smov 0  }
   0x2   :  { %s643_s14 = smov 0   ;;  %s645_s15 = smov 0  }
   0x3   :  { %s647_s16 = smov 0   ;;  %s649_s17 = smov 0  }
   0x4   :  { %s651_s18 = smov 0   ;;  %s653_s19 = smov 0  }
   0x5 LB: > { %s405_s20 = sadd.s32 4294967295, %s610_s19   ;;  %s406_s21 = sadd.s32 4294967294, %s610_s19   ;;  %s610_s19 = sphi %s653_s19, %s16_s19   ;;  %s606_s18 = sphi %s651_s18, %s812_s18   ;;  %s602_s17 = sphi %s649_s17, %s811_s17   ;;  %s598_s16 = sphi %s647_s16, %s810_s16   ;;  %s594_s15 = sphi %s645_s15, %s809_s15   ;;  %s590_s14 = sphi %s643_s14, %s808_s14   ;;  %s586_s13 = sphi %s641_s13, %s807_s13   ;;  %s582_s12 = sphi %s639_s12, %s806_s12  }
   0x6   : > { %s25_s22 = sadd.s32 1, %s602_s17  ;;  %s28_s23 = sadd.s32 1, %s606_s18 }
   0x7   : > { %p26_p0 = scmp.ge.s32.totalorder %s25_s22, 2  ;;  %p117_p1 = scmp.ne.s32.totalorder %s590_s14, %s586_s13 }
   0x8   : > { %p118_p2 = scmp.eq.s32.totalorder %s405_s20, 3  ;;  %p123_p5 = scmp.ne.s32.totalorder %s586_s13, %s582_s12 }
   0x9   : > { %s814_s22 = smov (%p26_p0, %s25_s22), 0  ;;  %s816_s23 = smov (!%p26_p0, %s28_s23), %s606_s18 }
   0xa   : > { %s103_s24 = ssub.s32 %s602_s17, %s814_s22  ;;  %p690_p3 = por %p118_p2, %p117_p1 }
   0xb   : > { %p30_p4 = scmp.ge.s32.totalorder %s816_s23, 2  ;;  %p124_p6 = scmp.eq.s32.totalorder %s406_s21, 3 }
   0xc   : > { %p409_p7 = scmp.ge.s32.totalorder %s610_s19, 1  ;;  %p159_p9 = scmp.lt.s32.totalorder %s610_s19, 5 }
   0xd   : > { %s818_s23 = smov (%p30_p4, %s816_s23), 0  ;;  %p699_p8 = por %p124_p6, %p123_p5 }
   0xe   : > { %s102_s27 = ssub.s32 %s606_s18, %s818_s23  ;;  %s107_s28 = sadd.s32 1, %s590_s14 }
   0xf   : > { %s104_s29 = sor.u32 %s103_s24, %s102_s27  ;;  %p160_p10 = pnand %p409_p7, %p159_p9 }
  0x10   : > { %p105_p11 = scmp.eq.s32.totalorder %s104_s29, 0  ;;  %p186_p12 = scmp.lt.s32.totalorder (!%p160_p10), %s598_s16, 1  ;;  %v612_v0 = vmov (!%p160_p10), 0.0   ;;  %v198_v1 = vld [vmem:[%s802_s2] sm:$0xff] (!%p160_p10)  ;;  %vm613_vm0 = vmmov (!%p160_p10), 0   ;;  %v200_v2 = vld [vmem:[%s802_s2 + $0x10] sm:$0xff] (!%p160_p10) }
  0x11   : > { %163 = sbr.rel (%p160_p10) target bundleno = 266 (0x10a), region = 32  ;;  %p188_p13 = scmp.lt.s32.totalorder (!%p160_p10), %s594_s15, 1  ;;  %422 = vmatprep.subr.mxu0 (!%p160_p10), %v612_v0  ;;  %433 = vmatprep.subr.mxu1 (!%p160_p10), %v612_v0  ;;  %v614_v3 = vmov (!%p160_p10), 0   ;;  %v199_v4 = vld [vmem:[%s802_s2 + $0x8] sm:$0xff] (!%p160_p10)  ;;  %v194_v5 = vld [vmem:[%s801_s1] sm:$0xff] (!%p160_p10)  ;;  %vm216_vm1 = vcmask (!%p160_p10), 64512  }
  0x12   : > { %s708_s30 = scalar_select %p105_p11, %s590_s14, %s107_s28  }
  0x13   : > { %424 = vmatprep.mubr.msk.f32.mxu0 (!%p160_p10), %vm613_vm0, %v612_v0  ;;  %427 = vmatprep.mubr.msk.f32.mxu1 (!%p160_p10), %vm613_vm0, %v612_v0  ;;  %v195_v6 = vld [vmem:[%s801_s1 + $0x8] sm:$0xff] (!%p160_p10)  ;;  %v196_v8 = vld [vmem:[%s801_s1 + $0x10] sm:$0xff] (!%p160_p10) }
  0x14   : > { %514 = vset.pattern.permute.xlu0 (!%p160_p10), %v614_v3  ;;  %515 = vset.pattern.permute.xlu1 (!%p160_p10), %v614_v3 }
  0x15   : > { %203 = vperm.xlu0 (!%p160_p10), %514, %v198_v1   ;;  %213 = vperm.xlu1 (!%p160_p10), %515, %v200_v2  }
  0x18   : > { %s187_s6 = scalar_select %p186_p12, %s598_s16, 1 }
  0x19   : > { %s189_s9 = scalar_select %p188_p13, %s594_s15, 1  ;;  %208 = vperm.xlu0 %514, %v199_v4  }
  0x1a   : > { %s410_s10 = sshll.u32 %s187_s6, 1  ;;  %s615_s6 = smov [#allocation2]  }
  0x1b   : > { %s191_s11 = sadd.s32 %s410_s10, %s189_s9  ;;  %s183_s10 = sand.u32 1, %s586_s13  }
  0x1c   : > { %s411_s24 = sshll.u32 %s191_s11, 3  ;;  %s436_s11 = smul.u32 6, %s598_s16 }
  0x1d   : > { %s193_s29 = scalar_lea.vmem %s800_s0, %s411_s24  ;;  %s435_s20 = smul.u32 24, %s183_s10 }
  0x1e   : > { %v197_v7 = vld [vmem:[%s193_s29] sm:$0xff]  ;;  %s321_s21 = sadd.s32 %s594_s15, %s436_s11  ;;  %s748_s4 = scalar_lea.sflag [#allocation3], %s183_s10 }
  0x1f   : > { %423 = vmatpush3.msra.mxu0 %v197_v7  ;;  %434 = vmatpush3.msra.mxu1 %v197_v7  ;;  %s185_s24 = scalar_lea.vmem [#allocation2], %s435_s20  ;;  %s415_s28 = sshll.u32 %s321_s21, 7 }
  0x20   : > { %425 = vmatmul.mubr.msk.f32.vlgmr.msra.gmra.mrb[0].mxu0 %vm216_vm1, %v194_v5  ;;  %428 = vmatmul.mubr.msk.f32.vlgmr.msra.gmra.mrb[0].mxu1 %vm216_vm1, %v195_v6  ;;  %s324_s27 = sshll.u32 %s185_s24, 4  ;;  %s746_s29 = scalar_lea.hbm %s803_s3, %s415_s28  ;;  %s741_s27 = int_to_ptr.vmem [resolvable:$true] %s324_s27 }
  0x21   : > { %430 = vmatprep.mubr.msk.f32.mxu1 %vm613_vm0, %v612_v0  ;;  %s516_s5 = scalar_lea.vmem %s741_s27, 384  ;;  %s520_s7 = sshll.u32 %s615_s6, 4  ;;  %s521_s7 = int_to_ptr.vmem [resolvable:$false] %s520_s7 }
  0x22   : > { %p517_p0 = scmp.ne.s32.totalorder %s741_s27, %s516_s5  ;;  %s522_s8 = scalar_lea.vmem %s521_s7, 768 }
  0x23   : > { %p523_p4 = scmp.lt.s32.totalorder %s741_s27, %s521_s7  ;;  %p524_p5 = scmp.lt.s32.totalorder %s522_s8, %s516_s5 }
  0x24   : > { %431 = vmatmul.mubr.msk.f32.gmra.mrb[2].mxu1 %vm216_vm1, %v196_v8  ;;  %p518_p1 = pnand %p517_p0, %p690_p3 }
  0x25   : > { %p525_p6 = por %p524_p5, %p523_p4 }
  0x26   : > { %p519_p2 = pneg %p518_p1 }
  0x28   : > { %p526_p7 = pnand %p525_p6, %p519_p2 }
  0x94   : > { %v204_v9 = vpop.permute.xlu0 %203  ;;  %v214_v17 = vpop.permute.xlu1 %213 }
  0x98   : > { %v209_v10 = vpop.permute.xlu0 %208 }
  0xf3   : > { %v292_v11 = vpop.f32.mrb[0].mxu0  ;;  %v297_v12 = vpop.f32.mrb[0].mxu1 }
  0xf4   : > { %v293_v13 = vadd.f32 %v292_v11, %v204_v9  ;;  %v298_v14 = vadd.f32 %v297_v12, %v209_v10  ;;  %v429_v15 = vpop.f32.mrb[1].mxu1  ;;  %v426_v16 = vpop.f32.mrb[1].mxu0 }
  0xf6   : > { %306 = vst [vmem:[%s185_s24] sm:$0xff] %v293_v13  ;;  %307 = vst [vmem:[%s185_s24 + $0x8] sm:$0xff] %v298_v14 }
  0xf7   : > { %v302_v18 = vpop.f32.mrb[2].mxu1 }
  0xf8   : > { %v303_v19 = vadd.f32 %v302_v18, %v214_v17  ;;  %v432_v20 = vpop.f32.mrb[3].mxu1 }
  0xfa   : > { %308 = vst [vmem:[%s185_s24 + $0x10] sm:$0xff] %v303_v19 }
  0xfb   : > { %529 = shalt.err (!%p526_p7)
}
  0xfc   : > { %s530_s9 = scalar_lea.hbm %s746_s29, 384  ;;  %s534_s20 = scalar_lea.hbm %s803_s3, 1536 }
  0xfd   : > { %p531_p9 = scmp.ne.s32.totalorder %s746_s29, %s530_s9  ;;  %p535_p12 = scmp.lt.u32.totalorder %s746_s29, %s803_s3 }
  0xfe   : > { %p536_p13 = scmp.lt.u32.totalorder %s534_s20, %s530_s9  ;;  %p538_p1 = scmp.lt.u32.totalorder %s530_s9, %s746_s29 }
  0xff   : > { %p532_p10 = pnand %p531_p9, %p690_p3 }
 0x100   : > { %p537_p0 = por %p536_p13, %p535_p12 }
 0x101   : > { %p533_p11 = pneg %p532_p10 }
 0x102   : > { %p539_p2 = por %p538_p1, %p537_p0 }
 0x104   : > { %p540_p4 = pnand %p539_p2, %p533_p11 }
 0x106   : > { %543 = shalt.err (!%p540_p4)
}
 0x107   : > { %s616_s28 = smov 128   ;;  %s617_s15 = smov 256  }
 0x108   : > { %s618_s16 = smov 8  }
 0x109   : > { %437 = dma.vmem_to_hbm [thread:$0]  (%p690_p3), %s741_s27, 384, %s746_s29, %s748_s4, %s616_s28, %s617_s15, %s618_s16  }
 0x10a PF: > { %p443_p5 = scmp.ge.s32.totalorder %s610_s19, 2  ;;  %s339_s5 = sand.u32 1, %s582_s12  }
 0x10b   : > { %s340_s6 = scalar_lea.sflag [#allocation3], %s339_s5 }
 0x10c   : > { %p440_p6 = pnand %p443_p5, %p699_p8 }
 0x10e   : > { %577 = dma.done.wait (!%p440_p6), %s340_s6, 384  }
 0x10f   : > { %579 = vsyncadd (!%p440_p6), %s340_s6, 4294966912  ;;  %s16_s19 = sadd.s32 1, %s610_s19   ;;  %s806_s12 = smov %s586_s13 }
 0x110   : > { %p13_p7 = scmp.ge.s32.totalorder %s16_s19, 6   ;;  %s807_s13 = smov %s590_s14 }
 0x111   : > { %s808_s14 = smov %s708_s30  ;;  %s809_s15 = smov %s602_s17 }
 0x112   : > { %s810_s16 = smov %s606_s18  ;;  %s811_s17 = smov %s814_s22 }
 0x113   : > { %s812_s18 = smov %s818_s23  ;;  %15 = sbr.rel (!%p13_p7) target bundleno = 5 (0x5), region = 67 }
 0x11a   :  { %345 = vsyncpa [#allocation3], 1 }
 0x11b   :  { %347 = vsyncpa [#allocation3 + $0x1], 1 }

</bundles_post_ra>
